<compile_context>
chip_gen: v5e
topology: v5e:2x2
jax: 0.10.0
libtpu: 0.0.40
codegen_flags: <defaults>
</compile_context>

<pallas_src>
import re

import jax
import jax.numpy as jnp
from jax.experimental import pallas as pl
from jax.experimental.pallas import tpu as pltpu

LANE = 128  # pad class dim to this many lanes


def _tpu_generation():
    """Best-effort TPU generation (5, 6, 7, ...). 0 if unknown -> safest (f32 VPU) path."""
    try:
        kind = jax.devices()[0].device_kind.lower()
        m = re.search(r"v(\d+)", kind)
        return int(m.group(1)) if m else 0
    except Exception:  # noqa: BLE001 - any failure -> conservative default
        return 0


def mlp_head_kernel(x_ref, w1_ref, b1_ref, w2_ref, b2_ref, w3_ref, b3_ref, out_ref):
    # x / w* are bf16 (MXU inputs), accumulation in f32 via preferred_element_type.
    # Elementwise (bias + ReLU) dtype follows the bias dtype: bf16 on v6e/v7x, f32 on v5e.
    vpu_dtype = b1_ref.dtype

    h1 = jnp.dot(x_ref[...], w1_ref[...], preferred_element_type=jnp.float32)
    h1 = jnp.maximum(h1.astype(vpu_dtype) + b1_ref[...], 0.0).astype(jnp.bfloat16)

    h2 = jnp.dot(h1, w2_ref[...], preferred_element_type=jnp.float32)
    h2 = jnp.maximum(h2.astype(vpu_dtype) + b2_ref[...], 0.0).astype(jnp.bfloat16)

    logits = jnp.dot(h2, w3_ref[...], preferred_element_type=jnp.float32)
    logits = logits + b3_ref[...].astype(jnp.float32)
    out_ref[...] = logits.astype(out_ref.dtype)


def _choose_tiling(batch, *, max_tile=512, want_two_steps=False):
    """Pick (tile_b, b_pad): tile_b multiple of 8, minimal padding, >=2 steps on request."""
    n_steps = pl.cdiv(batch, max_tile)
    if want_two_steps and batch >= 16:
        n_steps = max(n_steps, 2)
    tile_b = max(8, ((pl.cdiv(batch, n_steps) + 7) // 8) * 8)
    n_steps = pl.cdiv(batch, tile_b)
    return tile_b, n_steps * tile_b


def classifier_forward(embeddings, params, num_classes):
    """embeddings: [B, D] float32; params: dict with bf16 weights (w*, [in,out]) and f32
    biases (b*, [1,out]); final layer pre-padded to LANE output columns.
    Returns [B, num_classes] f32 logits."""
    B, D = embeddings.shape
    n_pad = params["w3"].shape[1]  # lane-padded class dim (128)
    H1 = params["w1"].shape[1]
    H2 = params["w2"].shape[1]

    gen = _tpu_generation()
    use_bf16_vpu = gen >= 6        # v6e/v7x: bf16-native VALU
    want_two_steps = gen >= 7      # v7x: 2 TensorCores per chip

    tile_b, b_pad = _choose_tiling(B, want_two_steps=want_two_steps)

    # Cast activations to bf16 once, outside the kernel, then pad the batch.
    x = embeddings.astype(jnp.bfloat16)
    if b_pad != B:
        x = jnp.pad(x, ((0, b_pad - B), (0, 0)))

    b1 = params["b1"].astype(jnp.bfloat16) if use_bf16_vpu else params["b1"]
    b2 = params["b2"].astype(jnp.bfloat16) if use_bf16_vpu else params["b2"]
    b3 = params["b3"]  # final bias always added in f32

    flops = 2 * b_pad * (D * H1 + H1 * H2 + H2 * n_pad)
    bytes_accessed = (
        x.size * x.dtype.itemsize
        + sum(int(a.size) * a.dtype.itemsize
              for a in (params["w1"], b1, params["w2"], b2, params["w3"], b3))
        + b_pad * n_pad * 4)
    cost = pl.CostEstimate(flops=flops, transcendentals=0, bytes_accessed=bytes_accessed)

    # Weights/biases stay resident across batch tiles (same block every grid step).
    def weight_spec(a):
        return pl.BlockSpec(a.shape, lambda i: (0, 0))

    out = pl.pallas_call(
        mlp_head_kernel,
        out_shape=jax.ShapeDtypeStruct((b_pad, n_pad), jnp.float32),
        grid=(b_pad // tile_b,),
        in_specs=[
            pl.BlockSpec((tile_b, D), lambda i: (i, 0)),
            weight_spec(params["w1"]), weight_spec(b1),
            weight_spec(params["w2"]), weight_spec(b2),
            weight_spec(params["w3"]), weight_spec(b3),
        ],
        out_specs=pl.BlockSpec((tile_b, n_pad), lambda i: (i, 0)),
        compiler_params=pltpu.CompilerParams(dimension_semantics=("parallel",)),
        cost_estimate=cost,
    )(x, params["w1"], b1, params["w2"], b2, params["w3"], b3)

    return out[:B, :num_classes]


def init_params(key, emb_dim, num_classes):
    """nn.Linear-style U(-1/sqrt(in), 1/sqrt(in)) init.
    Weights stored [in, out] in bf16; biases [1, out] in f32. Final layer padded to LANE."""
    def linear(k, fan_in, fan_out, pad_out=None):
        kw, kb = jax.random.split(k)
        bound = 1.0 / jnp.sqrt(fan_in)
        w = jax.random.uniform(kw, (fan_in, fan_out), jnp.float32, -bound, bound)
        b = jax.random.uniform(kb, (1, fan_out), jnp.float32, -bound, bound)
        if pad_out is not None and pad_out > fan_out:
            w = jnp.pad(w, ((0, 0), (0, pad_out - fan_out)))
            b = jnp.pad(b, ((0, 0), (0, pad_out - fan_out)))
        return w.astype(jnp.bfloat16), b

    k1, k2, k3 = jax.random.split(key, 3)
    w1, b1 = linear(k1, emb_dim, 512)
    w2, b2 = linear(k2, 512, 256)
    w3, b3 = linear(k3, 256, num_classes, pad_out=LANE)
    return dict(w1=w1, b1=b1, w2=w2, b2=b2, w3=w3, b3=b3)


def reference_forward(embeddings, p, num_classes, use_bf16_vpu):
    """Pure-JAX reference matching the kernel's bf16-MXU-input / f32-accumulate arithmetic
    and its generation-dependent bias+ReLU dtype."""
    vd = jnp.bfloat16 if use_bf16_vpu else jnp.float32
    f32 = lambda a: a.astype(jnp.float32)
    x = embeddings.astype(jnp.bfloat16).astype(jnp.float32)

    h1 = x @ f32(p["w1"])
    h1 = jnp.maximum(h1.astype(vd) + p["b1"].astype(vd), 0.0)
    h1 = h1.astype(jnp.bfloat16).astype(jnp.float32)

    h2 = h1 @ f32(p["w2"])
    h2 = jnp.maximum(h2.astype(vd) + p["b2"].astype(vd), 0.0)
    h2 = h2.astype(jnp.bfloat16).astype(jnp.float32)

    logits = h2 @ f32(p["w3"]) + p["b3"]
    return logits[:, :num_classes]


if __name__ == "__main__":
    key = jax.random.PRNGKey(0)
    k_emb, k_par = jax.random.split(key)

    B = 8            # batch of sentences
    EMB_DIM = 384    # e.g. all-MiniLM-L6-v2 sentence embedding dimension
    NUM_CLASSES = 4

    # Stand-in for SentenceTransformer.encode(sentences, convert_to_tensor=True)
    embeddings = jax.random.normal(k_emb, (B, EMB_DIM), jnp.float32)
    params = init_params(k_par, EMB_DIM, NUM_CLASSES)

    logits = classifier_forward(embeddings, params, NUM_CLASSES)
    jax.block_until_ready(logits)

    ref = reference_forward(embeddings, params, NUM_CLASSES,
                            use_bf16_vpu=_tpu_generation() >= 6)
    assert logits.shape == (B, NUM_CLASSES)
    assert jnp.allclose(logits, ref, atol=2e-2, rtol=2e-2), (
        jnp.max(jnp.abs(logits - ref)))

    print("KERNEL_OK")
</pallas_src>

<mosaic_0001>
module attributes {stable_mosaic.version = 11 : i64} {
  func.func @mlp_head_kernel(%arg0: i32, %arg1: memref<8x384xbf16, #tpu.memory_space<vmem>>, %arg2: memref<384x512xbf16, #tpu.memory_space<vmem>>, %arg3: memref<1x512xf32, #tpu.memory_space<vmem>>, %arg4: memref<512x256xbf16, #tpu.memory_space<vmem>>, %arg5: memref<1x256xf32, #tpu.memory_space<vmem>>, %arg6: memref<256x128xbf16, #tpu.memory_space<vmem>>, %arg7: memref<1x128xf32, #tpu.memory_space<vmem>>, %arg8: memref<8x128xf32, #tpu.memory_space<vmem>>) attributes {dimension_semantics = [#tpu.dimension_semantics<parallel>], iteration_bounds = array<i64: 1>, scalar_prefetch = 0 : i64, scratch_operands = 0 : i64, tpu.core_type = #tpu.core_type<tc>, window_params = [{transform_indices = @transform_0, window_bounds = array<i64: 8, 384>}, {pipeline_mode = #tpu.pipeline_mode<synchronous>, transform_indices = @transform_1, window_bounds = array<i64: 384, 512>}, {pipeline_mode = #tpu.pipeline_mode<synchronous>, transform_indices = @transform_2, window_bounds = array<i64: 1, 512>}, {pipeline_mode = #tpu.pipeline_mode<synchronous>, transform_indices = @transform_3, window_bounds = array<i64: 512, 256>}, {pipeline_mode = #tpu.pipeline_mode<synchronous>, transform_indices = @transform_4, window_bounds = array<i64: 1, 256>}, {pipeline_mode = #tpu.pipeline_mode<synchronous>, transform_indices = @transform_5, window_bounds = array<i64: 256, 128>}, {pipeline_mode = #tpu.pipeline_mode<synchronous>, transform_indices = @transform_6, window_bounds = array<i64: 1, 128>}, {transform_indices = @transform_7, window_bounds = array<i64: 8, 128>}]} {
    %c0 = arith.constant 0 : index
    %c0_0 = arith.constant 0 : index
    %0 = vector.load %arg1[%c0, %c0_0] : memref<8x384xbf16, #tpu.memory_space<vmem>>, vector<8x384xbf16>
    %c0_1 = arith.constant 0 : index
    %c0_2 = arith.constant 0 : index
    %1 = vector.load %arg2[%c0_1, %c0_2] : memref<384x512xbf16, #tpu.memory_space<vmem>>, vector<384x512xbf16>
    %cst = arith.constant dense<0.000000e+00> : vector<8x512xf32>
    %2 = tpu.matmul %0, %1, %cst {dimension_numbers = #tpu.dot_dimension_numbers<[1], [0], [0], [1], [0, 0, 1, 1], [], []>} : vector<8x384xbf16>, vector<384x512xbf16>, vector<8x512xf32> -> vector<8x512xf32>
    %c0_3 = arith.constant 0 : index
    %c0_4 = arith.constant 0 : index
    %3 = vector.load %arg3[%c0_3, %c0_4] : memref<1x512xf32, #tpu.memory_space<vmem>>, vector<1x512xf32>
    %4 = vector.broadcast %3 : vector<1x512xf32> to vector<8x512xf32>
    %5 = arith.addf %2, %4 : vector<8x512xf32>
    %cst_5 = arith.constant 0.000000e+00 : f32
    %6 = vector.broadcast %cst_5 : f32 to vector<8x512xf32>
    %7 = arith.maximumf %5, %6 : vector<8x512xf32>
    %8 = arith.truncf %7 : vector<8x512xf32> to vector<8x512xbf16>
    %c0_6 = arith.constant 0 : index
    %c0_7 = arith.constant 0 : index
    %9 = vector.load %arg4[%c0_6, %c0_7] : memref<512x256xbf16, #tpu.memory_space<vmem>>, vector<512x256xbf16>
    %cst_8 = arith.constant dense<0.000000e+00> : vector<8x256xf32>
    %10 = tpu.matmul %8, %9, %cst_8 {dimension_numbers = #tpu.dot_dimension_numbers<[1], [0], [0], [1], [0, 0, 1, 1], [], []>} : vector<8x512xbf16>, vector<512x256xbf16>, vector<8x256xf32> -> vector<8x256xf32>
    %c0_9 = arith.constant 0 : index
    %c0_10 = arith.constant 0 : index
    %11 = vector.load %arg5[%c0_9, %c0_10] : memref<1x256xf32, #tpu.memory_space<vmem>>, vector<1x256xf32>
    %12 = vector.broadcast %11 : vector<1x256xf32> to vector<8x256xf32>
    %13 = arith.addf %10, %12 : vector<8x256xf32>
    %cst_11 = arith.constant 0.000000e+00 : f32
    %14 = vector.broadcast %cst_11 : f32 to vector<8x256xf32>
    %15 = arith.maximumf %13, %14 : vector<8x256xf32>
    %16 = arith.truncf %15 : vector<8x256xf32> to vector<8x256xbf16>
    %c0_12 = arith.constant 0 : index
    %c0_13 = arith.constant 0 : index
    %17 = vector.load %arg6[%c0_12, %c0_13] : memref<256x128xbf16, #tpu.memory_space<vmem>>, vector<256x128xbf16>
    %cst_14 = arith.constant dense<0.000000e+00> : vector<8x128xf32>
    %18 = tpu.matmul %16, %17, %cst_14 {dimension_numbers = #tpu.dot_dimension_numbers<[1], [0], [0], [1], [0, 0, 1, 1], [], []>} : vector<8x256xbf16>, vector<256x128xbf16>, vector<8x128xf32> -> vector<8x128xf32>
    %c0_15 = arith.constant 0 : index
    %c0_16 = arith.constant 0 : index
    %19 = vector.load %arg7[%c0_15, %c0_16] : memref<1x128xf32, #tpu.memory_space<vmem>>, vector<1x128xf32>
    %20 = vector.broadcast %19 : vector<1x128xf32> to vector<8x128xf32>
    %21 = arith.addf %18, %20 : vector<8x128xf32>
    %c0_17 = arith.constant 0 : index
    %c0_18 = arith.constant 0 : index
    %22 = vector.load %arg8[%c0_17, %c0_18] : memref<8x128xf32, #tpu.memory_space<vmem>>, vector<8x128xf32>
    tpu.vector_store %arg8[%c0_17, %c0_18], %21 {strides = array<i32>} : memref<8x128xf32, #tpu.memory_space<vmem>>, vector<8x128xf32>,
    return
  }
  func.func @transform_0(%arg0: i32) -> (i32, i32) {
    %c0_i32 = arith.constant 0 : i32
    %c0_i32_0 = arith.constant 0 : i32
    return %arg0, %c0_i32 : i32, i32
  }
  func.func @transform_1(%arg0: i32) -> (i32, i32) {
    %c0_i32 = arith.constant 0 : i32
    %c0_i32_0 = arith.constant 0 : i32
    %c0_i32_1 = arith.constant 0 : i32
    return %c0_i32, %c0_i32_0 : i32, i32
  }
  func.func @transform_2(%arg0: i32) -> (i32, i32) {
    %c0_i32 = arith.constant 0 : i32
    %c0_i32_0 = arith.constant 0 : i32
    %c0_i32_1 = arith.constant 0 : i32
    return %c0_i32, %c0_i32_0 : i32, i32
  }
  func.func @transform_3(%arg0: i32) -> (i32, i32) {
    %c0_i32 = arith.constant 0 : i32
    %c0_i32_0 = arith.constant 0 : i32
    %c0_i32_1 = arith.constant 0 : i32
    return %c0_i32, %c0_i32_0 : i32, i32
  }
  func.func @transform_4(%arg0: i32) -> (i32, i32) {
    %c0_i32 = arith.constant 0 : i32
    %c0_i32_0 = arith.constant 0 : i32
    %c0_i32_1 = arith.constant 0 : i32
    return %c0_i32, %c0_i32_0 : i32, i32
  }
  func.func @transform_5(%arg0: i32) -> (i32, i32) {
    %c0_i32 = arith.constant 0 : i32
    %c0_i32_0 = arith.constant 0 : i32
    %c0_i32_1 = arith.constant 0 : i32
    return %c0_i32, %c0_i32_0 : i32, i32
  }
  func.func @transform_6(%arg0: i32) -> (i32, i32) {
    %c0_i32 = arith.constant 0 : i32
    %c0_i32_0 = arith.constant 0 : i32
    %c0_i32_1 = arith.constant 0 : i32
    return %c0_i32, %c0_i32_0 : i32, i32
  }
  func.func @transform_7(%arg0: i32) -> (i32, i32) {
    %c0_i32 = arith.constant 0 : i32
    %c0_i32_0 = arith.constant 0 : i32
    return %arg0, %c0_i32 : i32, i32
  }
}

</mosaic_0001>

<bundles_post_ra>
// kernel: tpu_custom_call.1
= control target key start
LH: loop header
LB: loop body
LE: loop exit
PB: predicated region body
PF: predicated region fallthrough
CT: control target
= control target key end

     0   :  { %12 = vsyncpa [#allocation3], 0  ;;  %s2688_s0 = inlined_call_operand.hbm [shape: bf16[8,384], index: 0, kind: input, shape index: {}]   ;;  %s2689_s1 = inlined_call_operand.hbm [shape: bf16[384,512], index: 1, kind: input, shape index: {}]   ;;  %s2690_s2 = inlined_call_operand.hbm [shape: f32[1,512], index: 2, kind: input, shape index: {}]   ;;  %s2691_s3 = inlined_call_operand.hbm [shape: bf16[512,256], index: 3, kind: input, shape index: {}]   ;;  %s2692_s4 = inlined_call_operand.vmem [shape: f32[1,256], index: 4, kind: input, shape index: {}]   ;;  %s2693_s5 = inlined_call_operand.hbm [shape: bf16[256,128], index: 5, kind: input, shape index: {}]   ;;  %s2694_s6 = inlined_call_operand.vmem [shape: f32[1,128], index: 6, kind: input, shape index: {}]   ;;  %s2695_s7 = inlined_call_operand.hbm [shape: f32[8,128], index: 7, kind: output, shape index: {}]  }
   0x1   :  { %13 = vsyncpa [#allocation6], 0 }
   0x2   :  { %14 = vsyncpa [#allocation9], 0  ;;  %s31_s26 = sshll.u32 %s2689_s1, 4  ;;  %s32_s26 = int_to_ptr.hbm [resolvable:$true] %s31_s26 }
   0x3   :  { %15 = vsyncpa [#allocation4], 0  ;;  %s2585_s27 = smov [#allocation5]   ;;  %s55_s8 = sshll.u32 %s2691_s3, 4  ;;  %s56_s8 = int_to_ptr.hbm [resolvable:$true] %s55_s8 }
   0x4   :  { %s33_s28 = sshll.u32 %s2585_s27, 4  ;;  %s2586_s9 = smov 256   ;;  %s34_s28 = int_to_ptr.vmem [resolvable:$true] %s33_s28 }
   0x5   :  { %s2587_s10 = smov 16   ;;  %s2588_s11 = smov [#allocation8]  }
   0x6   :  { %39 = dma.hbm_to_vmem [thread:$0]  %s32_s26, 12288, %s34_s28, [#allocation6], %s2586_s9, %s2586_s9, %s2587_s10  }
   0x7   :  { %s57_s12 = sshll.u32 %s2588_s11, 4  ;;  %s2589_s13 = smov 128   ;;  %s58_s12 = int_to_ptr.vmem [resolvable:$true] %s57_s12 }
   0x8   :  { %s2590_s14 = smov 8   ;;  %s21_s16 = sshll.u32 %s2688_s0, 4  ;;  %s22_s16 = int_to_ptr.hbm [resolvable:$true] %s21_s16 }
   0x9   :  { %63 = dma.hbm_to_vmem [thread:$0]  %s56_s8, 8192, %s58_s12, [#allocation9], %s2589_s13, %s2589_s13, %s2590_s14  }
   0xa   :  { %s2591_s17 = smov [#allocation2]   ;;  %s45_s20 = sshll.u32 %s2690_s2, 4  ;;  %s46_s20 = int_to_ptr.hbm [resolvable:$true] %s45_s20 }
   0xb   :  { %s23_s18 = sshll.u32 %s2591_s17, 4  ;;  %s2592_s21 = smov [#allocation7]   ;;  %s24_s18 = int_to_ptr.vmem [resolvable:$true] %s23_s18 }
   0xc   :  { %26 = dma.hbm_to_vmem [thread:$0]  %s22_s16, 192, %s24_s18, [#allocation3]  }
   0xd   :  { %s47_s22 = sshll.u32 %s2592_s21, 4  ;;  %s70_s25 = sshll.u32 %s2693_s5, 4  ;;  %s48_s22 = int_to_ptr.vmem [resolvable:$true] %s47_s22  ;;  %s71_s25 = int_to_ptr.hbm [resolvable:$true] %s70_s25 }
   0xe   :  { %50 = dma.hbm_to_vmem [thread:$0]  %s46_s20, 64, %s48_s22, [#allocation6]  }
   0xf   :  { %s2593_s0 = smov [#allocation10]   ;;  %s2594_s27 = smov 64  }
  0x10   :  { %s72_s26 = sshll.u32 %s2593_s0, 4  ;;  %s2595_s28 = smov 4   ;;  %s73_s26 = int_to_ptr.vmem [resolvable:$true] %s72_s26 }
  0x11   :  { %78 = dma.hbm_to_vmem [thread:$0]  %s71_s25, 2048, %s73_s26, [#allocation9], %s2594_s27, %s2594_s27, %s2595_s28  }
  0x12   :  { %2577 = dma.done.wait [#allocation3], 192  }
  0x13   :  { %2578 = vsyncadd [#allocation3], 4294967104 }
  0x14   :  { %2579 = dma.done.wait [#allocation6], 12352  }
  0x15   :  { %2580 = vsyncadd [#allocation6], 4294954944 }
  0x16   :  { %2581 = dma.done.wait [#allocation9], 10240  }
  0x17   :  { %2582 = vsyncadd [#allocation9], 4294957056  ;;  %v1654_v0 = vld [vmem:[#allocation5 + $0xe0] sm:$0xf]  ;;  %v2274_v1 = vld [vmem:[#allocation5 + $0xec] sm:$0xf0] }
  0x18   :  { %v1782_v2 = vld [vmem:[#allocation5 + $0x1e0] sm:$0xf]  ;;  %v1655_v3 = vor.u32 %v2274_v1, %v1654_v0  ;;  %v2306_v4 = vld [vmem:[#allocation5 + $0x1ec] sm:$0xf0]  ;;  %v2272_v9 = vld [vmem:[#allocation5 + $0xe4] sm:$0xf] }
  0x19   :  { %v1910_v5 = vld [vmem:[#allocation5 + $0x2e0] sm:$0xf]  ;;  %v2338_v6 = vld [vmem:[#allocation5 + $0x2ec] sm:$0xf0]  ;;  %v1783_v7 = vor.u32 %v2306_v4, %v1782_v2  ;;  %v1656_v10 = vld [vmem:[#allocation5 + $0xf0] sm:$0xf0] }
  0x1a   :  { %v1911_v8 = vor.u32 %v2338_v6, %v1910_v5  ;;  %v1638_v11 = vld [vmem:[#allocation5 + $0xc0] sm:$0xf]  ;;  %700 = vmatpush.bf16.msra.mxu0 %v1655_v3  ;;  %v1659_v12 = vor.u32 %v2272_v9, %v1656_v10  ;;  %v2270_v13 = vld [vmem:[#allocation5 + $0xcc] sm:$0xf0]  ;;  %v2268_v20 = vld [vmem:[#allocation5 + $0xc4] sm:$0xf] }
  0x1b   :  { %v1766_v14 = vld [vmem:[#allocation5 + $0x1c0] sm:$0xf]  ;;  %v2302_v15 = vld [vmem:[#allocation5 + $0x1cc] sm:$0xf0]  ;;  %713 = vmatpush.bf16.msra.mxu1 %v1783_v7  ;;  %v1639_v16 = vor.u32 %v2270_v13, %v1638_v11  ;;  %v1640_v22 = vld [vmem:[#allocation5 + $0xd0] sm:$0xf0] }
  0x1c   :  { %726 = vmatpush.bf16.msra.mxu2 %v1911_v8  ;;  %v1767_v17 = vor.u32 %v2302_v15, %v1766_v14  ;;  %v1894_v18 = vld [vmem:[#allocation5 + $0x2c0] sm:$0xf]  ;;  %v2334_v19 = vld [vmem:[#allocation5 + $0x2cc] sm:$0xf0]  ;;  %739 = vmatpush.bf16.msra.mxu3 %v1659_v12  ;;  %v1643_v25 = vor.u32 %v2268_v20, %v1640_v22  ;;  %v2264_v31 = vld [vmem:[#allocation5 + $0xa4] sm:$0xf] }
  0x1d   :  { %v1895_v21 = vor.u32 %v2334_v19, %v1894_v18  ;;  %v1622_v23 = vld [vmem:[#allocation5 + $0xa0] sm:$0xf]  ;;  %v2266_v24 = vld [vmem:[#allocation5 + $0xac] sm:$0xf0]  ;;  %v1624_v32 = vld [vmem:[#allocation5 + $0xb0] sm:$0xf0] }
  0x1e   :  { %v1750_v26 = vld [vmem:[#allocation5 + $0x1a0] sm:$0xf]  ;;  %v2298_v27 = vld [vmem:[#allocation5 + $0x1ac] sm:$0xf0]  ;;  %701 = vmatpush.bf16.msra.mxu0 %v1639_v16  ;;  %v1623_v29 = vor.u32 %v2266_v24, %v1622_v23  ;;  %v1627_v38 = vor.u32 %v2264_v31, %v1624_v32  ;;  %v2260_v42 = vld [vmem:[#allocation5 + $0x84] sm:$0xf] }
  0x1f   :  { %v1878_v28 = vld [vmem:[#allocation5 + $0x2a0] sm:$0xf]  ;;  %v2330_v30 = vld [vmem:[#allocation5 + $0x2ac] sm:$0xf0]  ;;  %714 = vmatpush.bf16.msra.mxu1 %v1767_v17  ;;  %v1751_v33 = vor.u32 %v2298_v27, %v1750_v26  ;;  %v1608_v43 = vld [vmem:[#allocation5 + $0x90] sm:$0xf0] }
  0x20   :  { %727 = vmatpush.bf16.msra.mxu2 %v1895_v21  ;;  %v1879_v34 = vor.u32 %v2330_v30, %v1878_v28  ;;  %v1606_v35 = vld [vmem:[#allocation5 + $0x80] sm:$0xf]  ;;  %v2262_v36 = vld [vmem:[#allocation5 + $0x8c] sm:$0xf0]  ;;  %740 = vmatpush.bf16.msra.mxu3 %v1643_v25  ;;  %v1611_v50 = vor.u32 %v2260_v42, %v1608_v43  ;;  %v2256_v54 = vld [vmem:[#allocation5 + $0x64] sm:$0xf] }
  0x21   :  { %v1734_v37 = vld [vmem:[#allocation5 + $0x180] sm:$0xf]  ;;  %v2294_v39 = vld [vmem:[#allocation5 + $0x18c] sm:$0xf0]  ;;  %v1607_v44 = vor.u32 %v2262_v36, %v1606_v35  ;;  %v1592_v55 = vld [vmem:[#allocation5 + $0x70] sm:$0xf0] }
  0x22   :  { %v1862_v40 = vld [vmem:[#allocation5 + $0x280] sm:$0xf]  ;;  %v2326_v41 = vld [vmem:[#allocation5 + $0x28c] sm:$0xf0]  ;;  %702 = vmatpush.bf16.msra.mxu0 %v1623_v29  ;;  %v1735_v45 = vor.u32 %v2294_v39, %v1734_v37  ;;  %v1595_v62 = vor.u32 %v2256_v54, %v1592_v55  ;;  %v2252_v2 = vld [vmem:[#allocation5 + $0x44] sm:$0xf] }
  0x23   :  { %715 = vmatpush.bf16.msra.mxu1 %v1751_v33  ;;  %v1863_v46 = vor.u32 %v2326_v41, %v1862_v40  ;;  %v1590_v47 = vld [vmem:[#allocation5 + $0x60] sm:$0xf]  ;;  %v2258_v48 = vld [vmem:[#allocation5 + $0x6c] sm:$0xf0]  ;;  %v1576_v3 = vld [vmem:[#allocation5 + $0x50] sm:$0xf0] }
  0x24   :  { %728 = vmatpush.bf16.msra.mxu2 %v1879_v34  ;;  %v1718_v49 = vld [vmem:[#allocation5 + $0x160] sm:$0xf]  ;;  %741 = vmatpush.bf16.msra.mxu3 %v1627_v38  ;;  %v2290_v51 = vld [vmem:[#allocation5 + $0x16c] sm:$0xf0]  ;;  %v1591_v56 = vor.u32 %v2258_v48, %v1590_v47  ;;  %v1579_v10 = vor.u32 %v2252_v2, %v1576_v3  ;;  %v2248_v14 = vld [vmem:[#allocation5 + $0x24] sm:$0xf] }
  0x25   :  { %v1846_v52 = vld [vmem:[#allocation5 + $0x260] sm:$0xf]  ;;  %v2322_v53 = vld [vmem:[#allocation5 + $0x26c] sm:$0xf0]  ;;  %v1719_v57 = vor.u32 %v2290_v51, %v1718_v49  ;;  %v1560_v15 = vld [vmem:[#allocation5 + $0x30] sm:$0xf0] }
  0x26   :  { %703 = vmatpush.bf16.msra.mxu0 %v1607_v44  ;;  %v1847_v58 = vor.u32 %v2322_v53, %v1846_v52  ;;  %v1574_v59 = vld [vmem:[#allocation5 + $0x40] sm:$0xf]  ;;  %v2254_v60 = vld [vmem:[#allocation5 + $0x4c] sm:$0xf0]  ;;  %v102_v25 = vld [vmem:[#allocation2 + $0x8] sm:$0xf]  ;;  %v1563_v26 = vor.u32 %v2248_v14, %v1560_v15 }
  0x27   :  { %716 = vmatpush.bf16.msra.mxu1 %v1735_v45  ;;  %v1702_v61 = vld [vmem:[#allocation5 + $0x140] sm:$0xf]  ;;  %v2286_v63 = vld [vmem:[#allocation5 + $0x14c] sm:$0xf0]  ;;  %v1575_v4 = vor.u32 %v2254_v60, %v1574_v59  ;;  %v2244_v27 = vld [vmem:[#allocation5 + $0x4] sm:$0xf]  ;;  %v213_v36 = vunpack.c.l.b16 %v102_v25 }
  0x28   :  { %729 = vmatpush.bf16.msra.mxu2 %v1863_v46  ;;  %742 = vmatpush.bf16.msra.mxu3 %v1611_v50  ;;  %v1830_v0 = vld [vmem:[#allocation5 + $0x240] sm:$0xf]  ;;  %v2318_v1 = vld [vmem:[#allocation5 + $0x24c] sm:$0xf0]  ;;  %v1703_v5 = vor.u32 %v2286_v63, %v1702_v61  ;;  %v1544_v28 = vld [vmem:[#allocation5 + $0x10] sm:$0xf0] }
  0x29   :  { %v1831_v6 = vor.u32 %v2318_v1, %v1830_v0  ;;  %v1558_v7 = vld [vmem:[#allocation5 + $0x20] sm:$0xf]  ;;  %v2250_v8 = vld [vmem:[#allocation5 + $0x2c] sm:$0xf0]  ;;  %v2304_v29 = vld [vmem:[#allocation5 + $0x1e4] sm:$0xf]  ;;  %v1547_v44 = vor.u32 %v2244_v27, %v1544_v28  ;;  %v2652_v52 = vpack.c.b16 %v213_v36, %v213_v36 }
  0x2a   :  { %704 = vmatpush.bf16.msra.mxu0 %v1591_v56  ;;  %v1686_v9 = vld [vmem:[#allocation5 + $0x120] sm:$0xf]  ;;  %v2282_v11 = vld [vmem:[#allocation5 + $0x12c] sm:$0xf0]  ;;  %v1559_v17 = vor.u32 %v2250_v8, %v1558_v7  ;;  %v1784_v30 = vld [vmem:[#allocation5 + $0x1f0] sm:$0xf0] }
  0x2b   :  { %717 = vmatpush.bf16.msra.mxu1 %v1719_v57  ;;  %v1814_v12 = vld [vmem:[#allocation5 + $0x220] sm:$0xf]  ;;  %v2314_v13 = vld [vmem:[#allocation5 + $0x22c] sm:$0xf0]  ;;  %v1687_v21 = vor.u32 %v2282_v11, %v1686_v9  ;;  %v2336_v31 = vld [vmem:[#allocation5 + $0x2e4] sm:$0xf]  ;;  %v1787_v45 = vor.u32 %v2304_v29, %v1784_v30 }
  0x2c   :  { %730 = vmatpush.bf16.msra.mxu2 %v1847_v58  ;;  %743 = vmatpush.bf16.msra.mxu3 %v1595_v62  ;;  %v1542_v16 = vld [vmem:[#allocation5] sm:$0xf]  ;;  %v2246_v18 = vld [vmem:[#allocation5 + $0xc] sm:$0xf0]  ;;  %v1815_v22 = vor.u32 %v2314_v13, %v1814_v12  ;;  %v1912_v32 = vld [vmem:[#allocation5 + $0x2f0] sm:$0xf0] }
  0x2d   :  { %v1670_v19 = vld [vmem:[#allocation5 + $0x100] sm:$0xf]  ;;  %v2278_v20 = vld [vmem:[#allocation5 + $0x10c] sm:$0xf0]  ;;  %v1543_v33 = vor.u32 %v2246_v18, %v1542_v16  ;;  %v1662_v34 = vld [vmem:[#allocation5 + $0xe8] sm:$0xf]  ;;  %v1915_v46 = vor.u32 %v2336_v31, %v1912_v32 }
  0x2e   :  { %705 = vmatpush.bf16.msra.mxu0 %v1575_v4  ;;  %v1798_v23 = vld [vmem:[#allocation5 + $0x200] sm:$0xf]  ;;  %v2310_v24 = vld [vmem:[#allocation5 + $0x20c] sm:$0xf0]  ;;  %v2275_v35 = vld [vmem:[#allocation5 + $0xf4] sm:$0xf0]  ;;  %v1671_v38 = vor.u32 %v2278_v20, %v1670_v19 }
  0x2f   :  { %718 = vmatpush.bf16.msra.mxu1 %v1703_v5  ;;  %v101_v37 = vld [vmem:[#allocation2] sm:$0xff]  ;;  %v1799_v39 = vor.u32 %v2310_v24, %v1798_v23  ;;  %v1790_v40 = vld [vmem:[#allocation5 + $0x1e8] sm:$0xf]  ;;  %v1663_v47 = vor.u32 %v2275_v35, %v1662_v34  ;;  %v2300_v48 = vld [vmem:[#allocation5 + $0x1c4] sm:$0xf]  ;;  %s2596_s30 = smov [#allocation11]  }
  0x30   :  { %731 = vmatpush.bf16.msra.mxu2 %v1831_v6  ;;  %744 = vmatpush.bf16.msra.mxu3 %v1579_v10  ;;  %v2307_v41 = vld [vmem:[#allocation5 + $0x1f4] sm:$0xf0]  ;;  %v211_v42 = vunpack.c.l.b16 %v101_v37  ;;  %v212_v43 = vunpack.c.h.b16 %v101_v37  ;;  %v1768_v49 = vld [vmem:[#allocation5 + $0x1d0] sm:$0xf0]  ;;  %v2332_v50 = vld [vmem:[#allocation5 + $0x2c4] sm:$0xf] }
  0x31   :  { %v1791_v51 = vor.u32 %v2307_v41, %v1790_v40  ;;  %v1896_v53 = vld [vmem:[#allocation5 + $0x2d0] sm:$0xf0]  ;;  %v1646_v54 = vld [vmem:[#allocation5 + $0xc8] sm:$0xf]  ;;  %v2271_v55 = vld [vmem:[#allocation5 + $0xd4] sm:$0xf0]  ;;  %v1771_v60 = vor.u32 %v2300_v48, %v1768_v49 }
  0x32   :  { %706 = vmatpush.bf16.msra.mxu0 %v1559_v17  ;;  %v1774_v56 = vld [vmem:[#allocation5 + $0x1c8] sm:$0xf]  ;;  %v2303_v57 = vld [vmem:[#allocation5 + $0x1d4] sm:$0xf0]  ;;  %v2654_v58 = vpack.c.b16 %v211_v42, %v211_v42  ;;  %v2656_v59 = vpack.c.b16 %v212_v43, %v212_v43  ;;  %v1899_v61 = vor.u32 %v2332_v50, %v1896_v53  ;;  %v1647_v62 = vor.u32 %v2271_v55, %v1646_v54  ;;  %v2296_v63 = vld [vmem:[#allocation5 + $0x1a4] sm:$0xf] }
  0x33   :  { %719 = vmatpush.bf16.msra.mxu1 %v1687_v21  ;;  %v1752_v0 = vld [vmem:[#allocation5 + $0x1b0] sm:$0xf0]  ;;  %v2328_v1 = vld [vmem:[#allocation5 + $0x2a4] sm:$0xf]  ;;  %v1775_v2 = vor.u32 %v2303_v57, %v1774_v56  ;;  %v1630_v4 = vld [vmem:[#allocation5 + $0xa8] sm:$0xf] }
  0x34   :  { %732 = vmatpush.bf16.msra.mxu2 %v1815_v22  ;;  %745 = vmatpush.bf16.msra.mxu3 %v1563_v26  ;;  %v1880_v3 = vld [vmem:[#allocation5 + $0x2b0] sm:$0xf0]  ;;  %v2267_v5 = vld [vmem:[#allocation5 + $0xb4] sm:$0xf0]  ;;  %v1758_v6 = vld [vmem:[#allocation5 + $0x1a8] sm:$0xf]  ;;  %v1755_v8 = vor.u32 %v2296_v63, %v1752_v0 }
  0x35   :  { %v2299_v7 = vld [vmem:[#allocation5 + $0x1b4] sm:$0xf0]  ;;  %v1883_v9 = vor.u32 %v2328_v1, %v1880_v3  ;;  %v1631_v10 = vor.u32 %v2267_v5, %v1630_v4  ;;  %v2292_v11 = vld [vmem:[#allocation5 + $0x184] sm:$0xf]  ;;  %v1736_v12 = vld [vmem:[#allocation5 + $0x190] sm:$0xf0] }
  0x36   :  { %707 = vmatpush.bf16.msra.mxu0 %v1543_v33  ;;  %v2324_v13 = vld [vmem:[#allocation5 + $0x284] sm:$0xf]  ;;  %v1759_v14 = vor.u32 %v2299_v7, %v1758_v6  ;;  %v1864_v15 = vld [vmem:[#allocation5 + $0x290] sm:$0xf0]  ;;  %v1614_v16 = vld [vmem:[#allocation5 + $0x88] sm:$0xf]  ;;  %v1739_v20 = vor.u32 %v2292_v11, %v1736_v12 }
  0x37   :  { %720 = vmatpush.bf16.msra.mxu1 %v1671_v38  ;;  %v2263_v17 = vld [vmem:[#allocation5 + $0x94] sm:$0xf0]  ;;  %v1742_v18 = vld [vmem:[#allocation5 + $0x188] sm:$0xf]  ;;  %v1867_v21 = vor.u32 %v2324_v13, %v1864_v15  ;;  %v2288_v23 = vld [vmem:[#allocation5 + $0x164] sm:$0xf] }
  0x38   :  { %733 = vmatpush.bf16.msra.mxu2 %v1799_v39  ;;  %746 = vmatpush.bf16.msra.mxu3 %v1547_v44  ;;  %v2295_v19 = vld [vmem:[#allocation5 + $0x194] sm:$0xf0]  ;;  %v1615_v22 = vor.u32 %v2263_v17, %v1614_v16  ;;  %v1720_v24 = vld [vmem:[#allocation5 + $0x170] sm:$0xf0]  ;;  %v2320_v25 = vld [vmem:[#allocation5 + $0x264] sm:$0xf] }
  0x39   :  { %708 = vmatmul.bf16.vlgmr.msra.gmra.mxu0 %v2654_v58  ;;  %v1743_v26 = vor.u32 %v2295_v19, %v1742_v18  ;;  %v1848_v27 = vld [vmem:[#allocation5 + $0x270] sm:$0xf0]  ;;  %v1598_v28 = vld [vmem:[#allocation5 + $0x68] sm:$0xf]  ;;  %v2259_v29 = vld [vmem:[#allocation5 + $0x74] sm:$0xf0]  ;;  %v1723_v32 = vor.u32 %v2288_v23, %v1720_v24 }
  0x3a   :  { %752 = vmatpush.bf16.msrb.mxu0 %v1787_v45  ;;  %721 = vmatmul.bf16.vlgmr.msra.gmra.mxu1 %v2656_v59  ;;  %v1726_v30 = vld [vmem:[#allocation5 + $0x168] sm:$0xf]  ;;  %v2291_v31 = vld [vmem:[#allocation5 + $0x174] sm:$0xf0]  ;;  %v1851_v33 = vor.u32 %v2320_v25, %v1848_v27  ;;  %v1599_v34 = vor.u32 %v2259_v29, %v1598_v28  ;;  %v2284_v35 = vld [vmem:[#allocation5 + $0x144] sm:$0xf] }
  0x3b   :  { %765 = vmatpush.bf16.msrb.mxu1 %v1915_v46  ;;  %734 = vmatmul.bf16.vlgmr.msra.gmra.mxu2 %v2652_v52  ;;  %v1704_v36 = vld [vmem:[#allocation5 + $0x150] sm:$0xf0]  ;;  %v2316_v37 = vld [vmem:[#allocation5 + $0x244] sm:$0xf]  ;;  %v1727_v38 = vor.u32 %v2291_v31, %v1726_v30  ;;  %v1582_v40 = vld [vmem:[#allocation5 + $0x48] sm:$0xf] }
  0x3c   :  { %778 = vmatpush.bf16.msrb.mxu2 %v1663_v47  ;;  %791 = vmatpush.bf16.msrb.mxu3 %v1791_v51  ;;  %v1832_v39 = vld [vmem:[#allocation5 + $0x250] sm:$0xf0]  ;;  %v2255_v41 = vld [vmem:[#allocation5 + $0x54] sm:$0xf0]  ;;  %v1710_v42 = vld [vmem:[#allocation5 + $0x148] sm:$0xf]  ;;  %v1707_v44 = vor.u32 %v2284_v35, %v1704_v36 }
  0x3d   :  { %747 = vmatmul.bf16.vlgmr.msra.gmra.mxu3 %v2654_v58  ;;  %v2287_v43 = vld [vmem:[#allocation5 + $0x154] sm:$0xf0]  ;;  %v1835_v45 = vor.u32 %v2316_v37, %v1832_v39  ;;  %v1583_v46 = vor.u32 %v2255_v41, %v1582_v40  ;;  %v2280_v47 = vld [vmem:[#allocation5 + $0x124] sm:$0xf]  ;;  %v1688_v48 = vld [vmem:[#allocation5 + $0x130] sm:$0xf0] }
  0x3e   :  { %753 = vmatpush.bf16.msrb.mxu0 %v1771_v60  ;;  %v2312_v49 = vld [vmem:[#allocation5 + $0x224] sm:$0xf]  ;;  %v1711_v50 = vor.u32 %v2287_v43, %v1710_v42  ;;  %v1816_v51 = vld [vmem:[#allocation5 + $0x230] sm:$0xf0]  ;;  %v1566_v53 = vld [vmem:[#allocation5 + $0x28] sm:$0xf]  ;;  %v1691_v57 = vor.u32 %v2280_v47, %v1688_v48 }
  0x3f   :  { %766 = vmatpush.bf16.msrb.mxu1 %v1899_v61  ;;  %v2251_v54 = vld [vmem:[#allocation5 + $0x34] sm:$0xf0]  ;;  %v1694_v55 = vld [vmem:[#allocation5 + $0x128] sm:$0xf]  ;;  %v2276_v60 = vld [vmem:[#allocation5 + $0x104] sm:$0xf] }
  0x40   :  { %779 = vmatpush.bf16.msrb.mxu2 %v1647_v62  ;;  %792 = vmatpush.bf16.msrb.mxu3 %v1775_v2  ;;  %v2283_v56 = vld [vmem:[#allocation5 + $0x134] sm:$0xf0]  ;;  %v1672_v61 = vld [vmem:[#allocation5 + $0x110] sm:$0xf0]  ;;  %v1819_v62 = vor.u32 %v2312_v49, %v1816_v51  ;;  %v1567_v63 = vor.u32 %v2251_v54, %v1566_v53  ;;  %v2308_v0 = vld [vmem:[#allocation5 + $0x204] sm:$0xf] }
  0x41   :  { %v1800_v1 = vld [vmem:[#allocation5 + $0x210] sm:$0xf0]  ;;  %v1550_v2 = vld [vmem:[#allocation5 + $0x8] sm:$0xf]  ;;  %v1695_v3 = vor.u32 %v2283_v56, %v1694_v55  ;;  %v2247_v4 = vld [vmem:[#allocation5 + $0x14] sm:$0xf0] }
  0x42   :  { %754 = vmatpush.bf16.msrb.mxu0 %v1755_v8  ;;  %v1678_v5 = vld [vmem:[#allocation5 + $0x108] sm:$0xf]  ;;  %v2279_v6 = vld [vmem:[#allocation5 + $0x114] sm:$0xf0]  ;;  %v1664_v11 = vld [vmem:[#allocation5 + $0xf8] sm:$0xf0]  ;;  %v1551_v15 = vor.u32 %v2247_v4, %v1550_v2 }
  0x43   :  { %767 = vmatpush.bf16.msrb.mxu1 %v1883_v9  ;;  %v1918_v7 = vld [vmem:[#allocation5 + $0x2e8] sm:$0xf]  ;;  %v2339_v8 = vld [vmem:[#allocation5 + $0x2f4] sm:$0xf0]  ;;  %v2273_v9 = vld [vmem:[#allocation5 + $0xec] sm:$0xf]  ;;  %v1679_v18 = vor.u32 %v2279_v6, %v1678_v5 }
  0x44   :  { %780 = vmatpush.bf16.msrb.mxu2 %v1631_v10  ;;  %793 = vmatpush.bf16.msrb.mxu3 %v1759_v14  ;;  %v1675_v10 = vor.u32 %v2276_v60, %v1672_v61  ;;  %v2305_v12 = vld [vmem:[#allocation5 + $0x1ec] sm:$0xf]  ;;  %v1792_v13 = vld [vmem:[#allocation5 + $0x1f8] sm:$0xf0]  ;;  %v1803_v14 = vor.u32 %v2308_v0, %v1800_v1  ;;  %v1919_v19 = vor.u32 %v2339_v8, %v1918_v7  ;;  %v2335_v23 = vld [vmem:[#allocation5 + $0x2d4] sm:$0xf0] }
  0x45   :  { %v2337_v16 = vld [vmem:[#allocation5 + $0x2ec] sm:$0xf]  ;;  %v1920_v17 = vld [vmem:[#allocation5 + $0x2f8] sm:$0xf0]  ;;  %v2331_v35 = vld [vmem:[#allocation5 + $0x2b4] sm:$0xf0] }
  0x46   :  { %755 = vmatpush.bf16.msrb.mxu0 %v1739_v20  ;;  %v1667_v20 = vor.u32 %v2273_v9, %v1664_v11  ;;  %v2269_v24 = vld [vmem:[#allocation5 + $0xcc] sm:$0xf]  ;;  %v1923_v25 = vor.u32 %v2337_v16, %v1920_v17  ;;  %v1776_v28 = vld [vmem:[#allocation5 + $0x1d8] sm:$0xf0]  ;;  %v2327_v47 = vld [vmem:[#allocation5 + $0x294] sm:$0xf0] }
  0x47   :  { %768 = vmatpush.bf16.msrb.mxu1 %v1867_v21  ;;  %v1795_v21 = vor.u32 %v2305_v12, %v1792_v13  ;;  %v2301_v27 = vld [vmem:[#allocation5 + $0x1cc] sm:$0xf]  ;;  %v1904_v30 = vld [vmem:[#allocation5 + $0x2d8] sm:$0xf0]  ;;  %v1854_v61 = vld [vmem:[#allocation5 + $0x268] sm:$0xf] }
  0x48   :  { %781 = vmatpush.bf16.msrb.mxu2 %v1615_v22  ;;  %794 = vmatpush.bf16.msrb.mxu3 %v1743_v26  ;;  %v1902_v22 = vld [vmem:[#allocation5 + $0x2c8] sm:$0xf]  ;;  %v1648_v26 = vld [vmem:[#allocation5 + $0xd8] sm:$0xf0]  ;;  %v2333_v29 = vld [vmem:[#allocation5 + $0x2cc] sm:$0xf] }
  0x49   :  { %v1903_v31 = vor.u32 %v2335_v23, %v1902_v22  ;;  %v2265_v36 = vld [vmem:[#allocation5 + $0xac] sm:$0xf]  ;;  %v1907_v37 = vor.u32 %v2333_v29, %v1904_v30  ;;  %v1760_v40 = vld [vmem:[#allocation5 + $0x1b8] sm:$0xf0]  ;;  %v1838_v9 = vld [vmem:[#allocation5 + $0x248] sm:$0xf] }
  0x4a   :  { %756 = vmatpush.bf16.msrb.mxu0 %v1723_v32  ;;  %v1651_v32 = vor.u32 %v2269_v24, %v1648_v26  ;;  %v2297_v39 = vld [vmem:[#allocation5 + $0x1ac] sm:$0xf]  ;;  %v1888_v42 = vld [vmem:[#allocation5 + $0x2b8] sm:$0xf0]  ;;  %v2315_v22 = vld [vmem:[#allocation5 + $0x234] sm:$0xf0] }
  0x4b   :  { %769 = vmatpush.bf16.msrb.mxu1 %v1851_v33  ;;  %v1779_v33 = vor.u32 %v2301_v27, %v1776_v28  ;;  %v2329_v41 = vld [vmem:[#allocation5 + $0x2ac] sm:$0xf]  ;;  %v1744_v53 = vld [vmem:[#allocation5 + $0x198] sm:$0xf0]  ;;  %s1526_s8 = sshll.u32 %s2596_s30, 4  ;;  %s1528_s11 = sshll.u32 %s2695_s7, 4  ;;  %s1527_s8 = int_to_ptr.vmem [resolvable:$true] %s1526_s8  ;;  %s1529_s11 = int_to_ptr.hbm [resolvable:$true] %s1528_s11 }
  0x4c   :  { %782 = vmatpush.bf16.msrb.mxu2 %v1599_v34  ;;  %795 = vmatpush.bf16.msrb.mxu3 %v1727_v38  ;;  %v1886_v34 = vld [vmem:[#allocation5 + $0x2a8] sm:$0xf]  ;;  %v1632_v38 = vld [vmem:[#allocation5 + $0xb8] sm:$0xf0]  ;;  %v2261_v48 = vld [vmem:[#allocation5 + $0x8c] sm:$0xf]  ;;  %v1891_v49 = vor.u32 %v2329_v41, %v1888_v42 }
  0x4d   :  { %v1887_v43 = vor.u32 %v2331_v35, %v1886_v34  ;;  %v2293_v51 = vld [vmem:[#allocation5 + $0x18c] sm:$0xf]  ;;  %v1872_v55 = vld [vmem:[#allocation5 + $0x298] sm:$0xf0]  ;;  %v2311_v34 = vld [vmem:[#allocation5 + $0x214] sm:$0xf0] }
  0x4e   :  { %757 = vmatpush.bf16.msrb.mxu0 %v1707_v44  ;;  %v1635_v44 = vor.u32 %v2265_v36, %v1632_v38  ;;  %v2325_v54 = vld [vmem:[#allocation5 + $0x28c] sm:$0xf]  ;;  %v1747_v60 = vor.u32 %v2293_v51, %v1744_v53  ;;  %v1600_v1 = vld [vmem:[#allocation5 + $0x78] sm:$0xf0]  ;;  %v1982_v42 = vld [vmem:[#allocation8 + $0x70] sm:$0xf] }
  0x4f   :  { %770 = vmatpush.bf16.msrb.mxu1 %v1835_v45  ;;  %v1763_v45 = vor.u32 %v2297_v39, %v1760_v40  ;;  %v1875_v0 = vor.u32 %v2325_v54, %v1872_v55  ;;  %v2289_v2 = vld [vmem:[#allocation5 + $0x16c] sm:$0xf]  ;;  %v1856_v5 = vld [vmem:[#allocation5 + $0x278] sm:$0xf0]  ;;  %v1974_v51 = vld [vmem:[#allocation8 + $0x60] sm:$0xf] }
  0x50   :  { %783 = vmatpush.bf16.msrb.mxu2 %v1583_v46  ;;  %796 = vmatpush.bf16.msrb.mxu3 %v1711_v50  ;;  %v1870_v46 = vld [vmem:[#allocation5 + $0x288] sm:$0xf]  ;;  %v1616_v50 = vld [vmem:[#allocation5 + $0x98] sm:$0xf0]  ;;  %v2321_v4 = vld [vmem:[#allocation5 + $0x26c] sm:$0xf] }
  0x51   :  { %v1871_v56 = vor.u32 %v2327_v47, %v1870_v46  ;;  %v2253_v11 = vld [vmem:[#allocation5 + $0x4c] sm:$0xf]  ;;  %v1859_v12 = vor.u32 %v2321_v4, %v1856_v5  ;;  %v1584_v13 = vld [vmem:[#allocation5 + $0x58] sm:$0xf0]  ;;  %v2038_v55 = vld [vmem:[#allocation8 + $0xe0] sm:$0xf] }
  0x52   :  { %758 = vmatpush.bf16.msrb.mxu0 %v1691_v57  ;;  %v1619_v57 = vor.u32 %v2261_v48, %v1616_v50  ;;  %v2317_v16 = vld [vmem:[#allocation5 + $0x24c] sm:$0xf]  ;;  %v1840_v17 = vld [vmem:[#allocation5 + $0x258] sm:$0xf0] }
  0x53   :  { %771 = vmatpush.bf16.msrb.mxu1 %v1819_v62  ;;  %v2323_v62 = vld [vmem:[#allocation5 + $0x274] sm:$0xf0]  ;;  %v2249_v23 = vld [vmem:[#allocation5 + $0x2c] sm:$0xf]  ;;  %v1843_v24 = vor.u32 %v2317_v16, %v1840_v17  ;;  %v1696_v27 = vld [vmem:[#allocation5 + $0x138] sm:$0xf0] }
  0x54   :  { %784 = vmatpush.bf16.msrb.mxu2 %v1567_v63  ;;  %797 = vmatpush.bf16.msrb.mxu3 %v1695_v3  ;;  %v2257_v63 = vld [vmem:[#allocation5 + $0x6c] sm:$0xf]  ;;  %v1728_v3 = vld [vmem:[#allocation5 + $0x178] sm:$0xf0]  ;;  %v1855_v6 = vor.u32 %v2323_v62, %v1854_v61 }
  0x55   :  { %v1603_v7 = vor.u32 %v2257_v63, %v1600_v1  ;;  %v1731_v8 = vor.u32 %v2289_v2, %v1728_v3  ;;  %v2281_v26 = vld [vmem:[#allocation5 + $0x12c] sm:$0xf]  ;;  %v1824_v29 = vld [vmem:[#allocation5 + $0x238] sm:$0xf0]  ;;  %v2030_v63 = vld [vmem:[#allocation8 + $0xd0] sm:$0xf] }
  0x56   :  { %759 = vmatpush.bf16.msrb.mxu0 %v1675_v10  ;;  %v2319_v10 = vld [vmem:[#allocation5 + $0x254] sm:$0xf0]  ;;  %v2313_v28 = vld [vmem:[#allocation5 + $0x22c] sm:$0xf]  ;;  %v1552_v36 = vld [vmem:[#allocation5 + $0x18] sm:$0xf0] }
  0x57   :  { %772 = vmatpush.bf16.msrb.mxu1 %v1803_v14  ;;  %v2285_v14 = vld [vmem:[#allocation5 + $0x14c] sm:$0xf]  ;;  %v1680_v39 = vld [vmem:[#allocation5 + $0x118] sm:$0xf0]  ;;  %v1958_v2 = vld [vmem:[#allocation8 + $0x40] sm:$0xf] }
  0x58   :  { %785 = vmatpush.bf16.msrb.mxu2 %v1551_v15  ;;  %798 = vmatpush.bf16.msrb.mxu3 %v1679_v18  ;;  %v1712_v15 = vld [vmem:[#allocation5 + $0x158] sm:$0xf0]  ;;  %v1839_v18 = vor.u32 %v2319_v10, %v1838_v9  ;;  %v2245_v35 = vld [vmem:[#allocation5 + $0xc] sm:$0xf]  ;;  %v1934_v10 = vld [vmem:[#allocation8 + $0x10] sm:$0xf] }
  0x59   :  { %760 = vmatmul.bf16.vlgmr.msrb.gmra.mxu0 %v2656_v59  ;;  %v2277_v38 = vld [vmem:[#allocation5 + $0x10c] sm:$0xf]  ;;  %v1808_v41 = vld [vmem:[#allocation5 + $0x218] sm:$0xf0]  ;;  %v1555_v47 = vor.u32 %v2245_v35, %v1552_v36  ;;  %v2346_v36 = vld [vmem:[#allocation8 + $0x34] sm:$0xf] }
  0x5a   :  { %804 = vmatpush.bf16.msra.mxu0 %v1919_v19  ;;  %773 = vmatmul.bf16.vlgmr.msrb.gmra.mxu1 %v2652_v52  ;;  %v1587_v19 = vor.u32 %v2253_v11, %v1584_v13  ;;  %v2309_v40 = vld [vmem:[#allocation5 + $0x20c] sm:$0xf]  ;;  %v2371_v46 = vld [vmem:[#allocation8 + $0xf4] sm:$0xf0]  ;;  %v1683_v48 = vor.u32 %v2277_v38, %v1680_v39  ;;  %v1998_v38 = vld [vmem:[#allocation8 + $0x90] sm:$0xf] }
  0x5b   :  { %817 = vmatpush.bf16.msra.mxu1 %v1667_v20  ;;  %786 = vmatmul.bf16.vlgmr.msrb.gmra.mxu2 %v2654_v58  ;;  %v1715_v20 = vor.u32 %v2285_v14, %v1712_v15  ;;  %v2353_v53 = vld [vmem:[#allocation8 + $0x64] sm:$0xf0]  ;;  %v2351_v61 = vld [vmem:[#allocation8 + $0x54] sm:$0xf0]  ;;  %v2354_v14 = vld [vmem:[#allocation8 + $0x74] sm:$0xf] }
  0x5c   :  { %830 = vmatpush.bf16.msra.mxu2 %v1795_v21  ;;  %843 = vmatpush.bf16.msra.mxu3 %v1923_v25  ;;  %v1822_v21 = vld [vmem:[#allocation5 + $0x228] sm:$0xf]  ;;  %v1568_v25 = vld [vmem:[#allocation5 + $0x38] sm:$0xf0]  ;;  %v2349_v3 = vld [vmem:[#allocation8 + $0x44] sm:$0xf0] }
  0x5d   :  { %799 = vmatmul.bf16.vlgmr.msrb.gmra.mxu3 %v2656_v59  ;;  %v1823_v30 = vor.u32 %v2315_v22, %v1822_v21  ;;  %v1959_v5 = vor.u32 %v2349_v3, %v1958_v2  ;;  %v2345_v9 = vld [vmem:[#allocation8 + $0x24] sm:$0xf0]  ;;  %v2343_v11 = vld [vmem:[#allocation8 + $0x14] sm:$0xf0]  ;;  %v1984_v15 = vld [vmem:[#allocation8 + $0x78] sm:$0xf0] }
  0x5e   :  { %805 = vmatpush.bf16.msra.mxu0 %v1903_v31  ;;  %v1806_v31 = vld [vmem:[#allocation5 + $0x208] sm:$0xf]  ;;  %v2341_v13 = vld [vmem:[#allocation8 + $0x4] sm:$0xf0]  ;;  %v1987_v17 = vor.u32 %v2354_v14, %v1984_v15  ;;  %v2022_v21 = vld [vmem:[#allocation8 + $0xc0] sm:$0xf] }
  0x5f   :  { %818 = vmatpush.bf16.msra.mxu1 %v1651_v32  ;;  %v1571_v32 = vor.u32 %v2249_v23, %v1568_v25  ;;  %v2365_v22 = vld [vmem:[#allocation8 + $0xc4] sm:$0xf0]  ;;  %v1968_v25 = vld [vmem:[#allocation8 + $0x58] sm:$0xf0]  ;;  %v2359_v39 = vld [vmem:[#allocation8 + $0x94] sm:$0xf0] }
  0x60   :  { %831 = vmatpush.bf16.msra.mxu2 %v1779_v33  ;;  %844 = vmatpush.bf16.msra.mxu3 %v1907_v37  ;;  %v1699_v33 = vor.u32 %v2281_v26, %v1696_v27  ;;  %v1827_v37 = vor.u32 %v2313_v28, %v1824_v29  ;;  %v2023_v23 = vor.u32 %v2365_v22, %v2022_v21  ;;  %v2014_v27 = vld [vmem:[#allocation8 + $0xb0] sm:$0xf]  ;;  %v2363_v28 = vld [vmem:[#allocation8 + $0xb4] sm:$0xf0]  ;;  %v1928_v2 = vld [vmem:[#allocation8 + $0x8] sm:$0xf0] }
  0x61   :  { %v2015_v29 = vor.u32 %v2363_v28, %v2014_v27  ;;  %v2086_v15 = vld [vmem:[#allocation8 + $0x140] sm:$0xf]  ;;  %v2364_v22 = vld [vmem:[#allocation8 + $0xc4] sm:$0xf]  ;;  %v2379_v27 = vld [vmem:[#allocation8 + $0x134] sm:$0xf0] }
  0x62   :  { %806 = vmatpush.bf16.msra.mxu0 %v1887_v43  ;;  %v2355_v43 = vld [vmem:[#allocation8 + $0x74] sm:$0xf0]  ;;  %v2158_v28 = vld [vmem:[#allocation8 + $0x1d0] sm:$0xf] }
  0x63   :  { %819 = vmatpush.bf16.msra.mxu1 %v1635_v44  ;;  %v1807_v44 = vor.u32 %v2311_v34, %v1806_v31  ;;  %v1983_v50 = vor.u32 %v2355_v43, %v1982_v42  ;;  %v1960_v31 = vld [vmem:[#allocation8 + $0x48] sm:$0xf0]  ;;  %v2361_v34 = vld [vmem:[#allocation8 + $0xa4] sm:$0xf0]  ;;  %v2387_v42 = vld [vmem:[#allocation8 + $0x174] sm:$0xf0] }
  0x64   :  { %832 = vmatpush.bf16.msra.mxu2 %v1763_v45  ;;  %845 = vmatpush.bf16.msra.mxu3 %v1891_v49  ;;  %v2046_v45 = vld [vmem:[#allocation8 + $0xf0] sm:$0xf]  ;;  %v1811_v49 = vor.u32 %v2309_v40, %v1808_v41  ;;  %v2344_v43 = vld [vmem:[#allocation8 + $0x24] sm:$0xf] }
  0x65   :  { %v2047_v54 = vor.u32 %v2371_v46, %v2046_v45  ;;  %v2110_v41 = vld [vmem:[#allocation8 + $0x170] sm:$0xf]  ;;  %v1999_v46 = vor.u32 %v2359_v39, %v1998_v38  ;;  %v2070_v38 = vld [vmem:[#allocation8 + $0x120] sm:$0xf]  ;;  %v2377_v39 = vld [vmem:[#allocation8 + $0x124] sm:$0xf0] }
  0x66   :  { %807 = vmatpush.bf16.msra.mxu0 %v1871_v56  ;;  %v2369_v56 = vld [vmem:[#allocation8 + $0xe4] sm:$0xf0]  ;;  %v2111_v45 = vor.u32 %v2387_v42, %v2110_v41 }
  0x67   :  { %820 = vmatpush.bf16.msra.mxu1 %v1619_v57  ;;  %v1975_v57 = vor.u32 %v2353_v53, %v1974_v51  ;;  %v2039_v62 = vor.u32 %v2369_v56, %v2038_v55  ;;  %v2370_v53 = vld [vmem:[#allocation8 + $0xf4] sm:$0xf] }
  0x68   :  { %833 = vmatpush.bf16.msra.mxu2 %v1747_v60  ;;  %846 = vmatpush.bf16.msra.mxu3 %v1875_v0  ;;  %v1966_v60 = vld [vmem:[#allocation8 + $0x50] sm:$0xf]  ;;  %v2367_v0 = vld [vmem:[#allocation8 + $0xd4] sm:$0xf0]  ;;  %v2342_v56 = vld [vmem:[#allocation8 + $0x14] sm:$0xf] }
  0x69   :  { %v1967_v1 = vor.u32 %v2351_v61, %v1966_v60  ;;  %v2031_v4 = vor.u32 %v2367_v0, %v2030_v63  ;;  %v2368_v63 = vld [vmem:[#allocation8 + $0xe4] sm:$0xf]  ;;  %v2040_v0 = vld [vmem:[#allocation8 + $0xe8] sm:$0xf0] }
  0x6a   :  { %808 = vmatpush.bf16.msra.mxu0 %v1855_v6  ;;  %v1950_v6 = vld [vmem:[#allocation8 + $0x30] sm:$0xf]  ;;  %v2043_v3 = vor.u32 %v2368_v63, %v2040_v0  ;;  %v2373_v63 = vld [vmem:[#allocation8 + $0x104] sm:$0xf0]  ;;  %v2134_v0 = vld [vmem:[#allocation8 + $0x1a0] sm:$0xf] }
  0x6b   :  { %821 = vmatpush.bf16.msra.mxu1 %v1603_v7  ;;  %v2347_v7 = vld [vmem:[#allocation8 + $0x34] sm:$0xf0] }
  0x6c   :  { %834 = vmatpush.bf16.msra.mxu2 %v1731_v8  ;;  %847 = vmatpush.bf16.msra.mxu3 %v1859_v12  ;;  %v1951_v8 = vor.u32 %v2347_v7, %v1950_v6  ;;  %v1926_v12 = vld [vmem:[#allocation8] sm:$0xf]  ;;  %v2094_v6 = vld [vmem:[#allocation8 + $0x150] sm:$0xf]  ;;  %v2383_v7 = vld [vmem:[#allocation8 + $0x154] sm:$0xf0] }
  0x6d   :  { %v1927_v16 = vor.u32 %v2341_v13, %v1926_v12 }
  0x6e   :  { %809 = vmatpush.bf16.msra.mxu0 %v1839_v18  ;;  %v2352_v18 = vld [vmem:[#allocation8 + $0x64] sm:$0xf] }
  0x6f   :  { %822 = vmatpush.bf16.msra.mxu1 %v1587_v19  ;;  %v1976_v19 = vld [vmem:[#allocation8 + $0x68] sm:$0xf0] }
  0x70   :  { %835 = vmatpush.bf16.msra.mxu2 %v1715_v20  ;;  %848 = vmatpush.bf16.msra.mxu3 %v1843_v24  ;;  %v1979_v20 = vor.u32 %v2352_v18, %v1976_v19  ;;  %v2350_v24 = vld [vmem:[#allocation8 + $0x54] sm:$0xf] }
  0x71   :  { %v1971_v26 = vor.u32 %v2350_v24, %v1968_v25 }
  0x72   :  { %810 = vmatpush.bf16.msra.mxu0 %v1823_v30  ;;  %v2348_v30 = vld [vmem:[#allocation8 + $0x44] sm:$0xf] }
  0x73   :  { %823 = vmatpush.bf16.msra.mxu1 %v1571_v32  ;;  %v2006_v32 = vld [vmem:[#allocation8 + $0xa0] sm:$0xf] }
  0x74   :  { %836 = vmatpush.bf16.msra.mxu2 %v1699_v33  ;;  %849 = vmatpush.bf16.msra.mxu3 %v1827_v37  ;;  %v1963_v33 = vor.u32 %v2348_v30, %v1960_v31  ;;  %v2007_v35 = vor.u32 %v2361_v34, %v2006_v32  ;;  %v1952_v37 = vld [vmem:[#allocation8 + $0x38] sm:$0xf0]  ;;  %v2399_v31 = vld [vmem:[#allocation8 + $0x1d4] sm:$0xf0]  ;;  %v2362_v34 = vld [vmem:[#allocation8 + $0xb4] sm:$0xf] }
  0x75   :  { %v1955_v40 = vor.u32 %v2346_v36, %v1952_v37 }
  0x76   :  { %811 = vmatpush.bf16.msra.mxu0 %v1807_v44  ;;  %v1944_v44 = vld [vmem:[#allocation8 + $0x28] sm:$0xf0] }
  0x77   :  { %824 = vmatpush.bf16.msra.mxu1 %v1555_v47  ;;  %v2102_v47 = vld [vmem:[#allocation8 + $0x160] sm:$0xf]  ;;  %v1947_v51 = vor.u32 %v2344_v43, %v1944_v44  ;;  %v2071_v44 = vor.u32 %v2377_v39, %v2070_v38  ;;  %v2080_v39 = vld [vmem:[#allocation8 + $0x138] sm:$0xf0] }
  0x78   :  { %837 = vmatpush.bf16.msra.mxu2 %v1683_v48  ;;  %850 = vmatpush.bf16.msra.mxu3 %v1811_v49  ;;  %v1990_v48 = vld [vmem:[#allocation8 + $0x80] sm:$0xf]  ;;  %v2357_v49 = vld [vmem:[#allocation8 + $0x84] sm:$0xf0] }
  0x79   :  { %812 = vmatmul.bf16.vlgmr.msra.gmra.mxu0 %v2652_v52  ;;  %v1991_v60 = vor.u32 %v2357_v49, %v1990_v48  ;;  %v2008_v48 = vld [vmem:[#allocation8 + $0xa8] sm:$0xf0]  ;;  %v2062_v49 = vld [vmem:[#allocation8 + $0x110] sm:$0xf] }
  0x7a   :  { %1254 = vmatpush.bf16.msrb.mxu0 %v1983_v50  ;;  %825 = vmatmul.bf16.vlgmr.msra.gmra.mxu1 %v2654_v58  ;;  %v1942_v58 = vld [vmem:[#allocation8 + $0x20] sm:$0xf]  ;;  %v2385_v50 = vld [vmem:[#allocation8 + $0x164] sm:$0xf0] }
  0x7b   :  { %1267 = vmatpush.bf16.msrb.mxu1 %v2047_v54  ;;  %838 = vmatmul.bf16.vlgmr.msra.gmra.mxu2 %v2656_v59  ;;  %v1943_v59 = vor.u32 %v2345_v9, %v1942_v58  ;;  %v2048_v54 = vld [vmem:[#allocation8 + $0xf8] sm:$0xf0]  ;;  %v2103_v55 = vor.u32 %v2385_v50, %v2102_v47  ;;  %v2095_v9 = vor.u32 %v2383_v7, %v2094_v6  ;;  %v2375_v50 = vld [vmem:[#allocation8 + $0x114] sm:$0xf0]  ;;  %v2356_v7 = vld [vmem:[#allocation8 + $0x84] sm:$0xf] }
  0x7c   :  { %851 = vmatmul.bf16.vlgmr.msra.gmra.mxu3 %v2652_v52  ;;  %v1935_v52 = vor.u32 %v2343_v11, %v1934_v10  ;;  %1280 = vmatpush.bf16.msrb.mxu2 %v2111_v45  ;;  %v2051_v61 = vor.u32 %v2370_v53, %v2048_v54  ;;  %v2366_v11 = vld [vmem:[#allocation8 + $0xd4] sm:$0xf]  ;;  %v2397_v45 = vld [vmem:[#allocation8 + $0x1c4] sm:$0xf0]  ;;  %v2142_v54 = vld [vmem:[#allocation8 + $0x1b0] sm:$0xf] }
  0x7d   :  { %v2112_v6 = vld [vmem:[#allocation8 + $0x178] sm:$0xf0] }
  0x7e   :  { %1255 = vmatpush.bf16.msrb.mxu0 %v1975_v57  ;;  %v1936_v57 = vld [vmem:[#allocation8 + $0x18] sm:$0xf0] }
  0x7f   :  { %1268 = vmatpush.bf16.msrb.mxu1 %v2039_v62  ;;  %v1939_v62 = vor.u32 %v2342_v56, %v1936_v57  ;;  %v2358_v56 = vld [vmem:[#allocation8 + $0x94] sm:$0xf]  ;;  %v2063_v57 = vor.u32 %v2375_v50, %v2062_v49  ;;  %v2376_v49 = vld [vmem:[#allocation8 + $0x124] sm:$0xf]  ;;  %v2072_v50 = vld [vmem:[#allocation8 + $0x128] sm:$0xf0] }
  0x80   :  { %1281 = vmatpush.bf16.msrb.mxu2 %v2103_v55  ;;  %v2395_v55 = vld [vmem:[#allocation8 + $0x1b4] sm:$0xf0] }
  0x82   :  { %1256 = vmatpush.bf16.msrb.mxu0 %v1967_v1  ;;  %v2340_v1 = vld [vmem:[#allocation8 + $0x4] sm:$0xf] }
  0x83   :  { %1269 = vmatpush.bf16.msrb.mxu1 %v2031_v4  ;;  %v2670_v4 = vld [vmem:[#allocation7] sm:$0xf] }
  0x84   :  { %v201_v58 = vperm.slane %v2670_v4, 0  ;;  %1282 = vmatpush.bf16.msrb.mxu2 %v2095_v9 }
  0x86   :  { %1257 = vmatpush.bf16.msrb.mxu0 %v1959_v5  ;;  %v1931_v5 = vor.u32 %v2340_v1, %v1928_v2 }
  0x87   :  { %1270 = vmatpush.bf16.msrb.mxu1 %v2023_v23  ;;  %v2024_v23 = vld [vmem:[#allocation8 + $0xc8] sm:$0xf0] }
  0x88   :  { %v2027_v25 = vor.u32 %v2364_v22, %v2024_v23  ;;  %v2096_v22 = vld [vmem:[#allocation8 + $0x158] sm:$0xf0]  ;;  %v2402_v23 = vld [vmem:[#allocation8 + $0x1f4] sm:$0xf] }
  0x8a   :  { %1258 = vmatpush.bf16.msrb.mxu0 %v1951_v8  ;;  %v2174_v8 = vld [vmem:[#allocation8 + $0x1f0] sm:$0xf] }
  0x8b   :  { %1271 = vmatpush.bf16.msrb.mxu1 %v2015_v29 }
  0x8e   :  { %1259 = vmatpush.bf16.msrb.mxu0 %v1943_v59  ;;  %v2403_v59 = vld [vmem:[#allocation8 + $0x1f4] sm:$0xf0] }
  0x8f   :  { %1272 = vmatpush.bf16.msrb.mxu1 %v2007_v35  ;;  %v2175_v10 = vor.u32 %v2403_v59, %v2174_v8  ;;  %v2016_v35 = vld [vmem:[#allocation8 + $0xb8] sm:$0xf0]  ;;  %v1992_v8 = vld [vmem:[#allocation8 + $0x88] sm:$0xf0] }
  0x90   :  { %v2019_v37 = vor.u32 %v2362_v34, %v2016_v35  ;;  %v2168_v35 = vld [vmem:[#allocation8 + $0x1e8] sm:$0xf0] }
  0x91   :  { %1293 = vmatpush.bf16.msrb.mxu3 %v2175_v10 }
  0x92   :  { %1260 = vmatpush.bf16.msrb.mxu0 %v1935_v52  ;;  %v2032_v52 = vld [vmem:[#allocation8 + $0xd8] sm:$0xf0] }
  0x93   :  { %1273 = vmatpush.bf16.msrb.mxu1 %v1999_v46  ;;  %v2035_v12 = vor.u32 %v2366_v11, %v2032_v52  ;;  %v2360_v46 = vld [vmem:[#allocation8 + $0xa4] sm:$0xf]  ;;  %v1995_v11 = vor.u32 %v2356_v7, %v1992_v8  ;;  %v2126_v52 = vld [vmem:[#allocation8 + $0x190] sm:$0xf] }
  0x94   :  { %v2011_v53 = vor.u32 %v2360_v46, %v2008_v48 }
  0x96   :  { %1261 = vmatpush.bf16.msrb.mxu0 %v1927_v16  ;;  %v2381_v16 = vld [vmem:[#allocation8 + $0x144] sm:$0xf0] }
  0x97   :  { %1274 = vmatpush.bf16.msrb.mxu1 %v1991_v60  ;;  %v2087_v19 = vor.u32 %v2381_v16, %v2086_v15  ;;  %v2000_v60 = vld [vmem:[#allocation8 + $0x98] sm:$0xf0]  ;;  %v2104_v15 = vld [vmem:[#allocation8 + $0x168] sm:$0xf0]  ;;  %v202_v16 = vperm.slane %v2670_v4, 1 }
  0x98   :  { %v2003_v2 = vor.u32 %v2358_v56, %v2000_v60  ;;  %v2064_v60 = vld [vmem:[#allocation8 + $0x118] sm:$0xf0] }
  0x99   :  { %1283 = vmatpush.bf16.msrb.mxu2 %v2087_v19  ;;  %v2389_v19 = vld [vmem:[#allocation8 + $0x184] sm:$0xf0] }
  0x9a   :  { %1306 = vmatpush.bf16.msra.mxu0 %v1987_v17  ;;  %v2166_v17 = vld [vmem:[#allocation8 + $0x1e0] sm:$0xf] }
  0x9b   :  { %1319 = vmatpush.bf16.msra.mxu1 %v2051_v61  ;;  %v2143_v61 = vor.u32 %v2395_v55, %v2142_v54  ;;  %v2075_v54 = vor.u32 %v2376_v49, %v2072_v50  ;;  %v2152_v55 = vld [vmem:[#allocation8 + $0x1c8] sm:$0xf0]  ;;  %v2416_v49 = vld [vmem:[#allocation10 + $0x60] sm:$0xff] }
  0x9e   :  { %1307 = vmatpush.bf16.msra.mxu0 %v1979_v20  ;;  %v2401_v20 = vld [vmem:[#allocation8 + $0x1e4] sm:$0xf0] }
  0x9f   :  { %1320 = vmatpush.bf16.msra.mxu1 %v2043_v3  ;;  %v2167_v21 = vor.u32 %v2401_v20, %v2166_v17  ;;  %v2393_v3 = vld [vmem:[#allocation8 + $0x1a4] sm:$0xf0] }
  0xa0   :  { %v2135_v59 = vor.u32 %v2393_v3, %v2134_v0  ;;  %v2372_v0 = vld [vmem:[#allocation8 + $0x104] sm:$0xf] }
  0xa1   :  { %1294 = vmatpush.bf16.msrb.mxu3 %v2167_v21  ;;  %v2382_v21 = vld [vmem:[#allocation8 + $0x154] sm:$0xf]  ;;  %v2392_v3 = vld [vmem:[#allocation8 + $0x1a4] sm:$0xf] }
  0xa2   :  { %1308 = vmatpush.bf16.msra.mxu0 %v1971_v26  ;;  %v2078_v26 = vld [vmem:[#allocation8 + $0x130] sm:$0xf] }
  0xa3   :  { %1321 = vmatpush.bf16.msra.mxu1 %v2035_v12  ;;  %v2079_v30 = vor.u32 %v2379_v27, %v2078_v26  ;;  %v2391_v12 = vld [vmem:[#allocation8 + $0x194] sm:$0xf0]  ;;  %v2176_v26 = vld [vmem:[#allocation8 + $0x1f8] sm:$0xf0] }
  0xa4   :  { %v2179_v27 = vor.u32 %v2402_v23, %v2176_v26 }
  0xa5   :  { %1284 = vmatpush.bf16.msrb.mxu2 %v2079_v30  ;;  %v2088_v30 = vld [vmem:[#allocation8 + $0x148] sm:$0xf0] }
  0xa6   :  { %1309 = vmatpush.bf16.msra.mxu0 %v1963_v33  ;;  %v2159_v33 = vor.u32 %v2399_v31, %v2158_v28  ;;  %v2400_v31 = vld [vmem:[#allocation8 + $0x1e4] sm:$0xf] }
  0xa7   :  { %1322 = vmatpush.bf16.msra.mxu1 %v2027_v25  ;;  %v2099_v25 = vor.u32 %v2382_v21, %v2096_v22 }
  0xa8   :  { %1295 = vmatpush.bf16.msrb.mxu3 %v2159_v33 }
  0xa9   :  { %1285 = vmatpush.bf16.msrb.mxu2 %v2071_v44 }
  0xaa   :  { %1310 = vmatpush.bf16.msra.mxu0 %v1955_v40  ;;  %v2150_v40 = vld [vmem:[#allocation8 + $0x1c0] sm:$0xf] }
  0xab   :  { %1323 = vmatpush.bf16.msra.mxu1 %v2019_v37  ;;  %v2151_v47 = vor.u32 %v2397_v45, %v2150_v40  ;;  %v2171_v37 = vor.u32 %v2400_v31, %v2168_v35  ;;  %v2398_v40 = vld [vmem:[#allocation8 + $0x1d4] sm:$0xf] }
  0xac   :  { %v2410_v35 = vld [vmem:[#allocation10 + $0x30] sm:$0xff] }
  0xad   :  { %1296 = vmatpush.bf16.msrb.mxu3 %v2151_v47  ;;  %1286 = vmatpush.bf16.msrb.mxu2 %v2063_v57  ;;  %v2374_v57 = vld [vmem:[#allocation8 + $0x114] sm:$0xf] }
  0xae   :  { %1311 = vmatpush.bf16.msra.mxu0 %v1947_v51 }
  0xaf   :  { %1324 = vmatpush.bf16.msra.mxu1 %v2011_v53 }
  0xb1   :  { %1297 = vmatpush.bf16.msrb.mxu3 %v2143_v61  ;;  %v2394_v61 = vld [vmem:[#allocation8 + $0x1b4] sm:$0xf] }
  0xb2   :  { %1312 = vmatpush.bf16.msra.mxu0 %v1939_v62  ;;  %v2054_v62 = vld [vmem:[#allocation8 + $0x100] sm:$0xf] }
  0xb3   :  { %v2055_v9 = vor.u32 %v2373_v63, %v2054_v62  ;;  %1325 = vmatpush.bf16.msra.mxu1 %v2003_v2  ;;  %v2067_v62 = vor.u32 %v2374_v57, %v2064_v60  ;;  %v2144_v63 = vld [vmem:[#allocation8 + $0x1b8] sm:$0xf0]  ;;  %v2412_v57 = vld [vmem:[#allocation10 + $0x40] sm:$0xff] }
  0xb4   :  { %v2147_v2 = vor.u32 %v2394_v61, %v2144_v63 }
  0xb5   :  { %1287 = vmatpush.bf16.msrb.mxu2 %v2055_v9  ;;  %1298 = vmatpush.bf16.msrb.mxu3 %v2135_v59  ;;  %v203_v9 = vperm.slane %v2670_v4, 2  ;;  %v2390_v59 = vld [vmem:[#allocation8 + $0x194] sm:$0xf] }
  0xb6   :  { %1313 = vmatpush.bf16.msra.mxu0 %v1931_v5  ;;  %v709_v13 = vpop.f32.mrf.mxu0  ;;  %v2386_v5 = vld [vmem:[#allocation8 + $0x174] sm:$0xf] }
  0xb7   :  { %v722_v14 = vpop.f32.mrf.mxu1  ;;  %v710_v18 = vadd.f32 %v709_v13, %v201_v58  ;;  %v2115_v10 = vor.u32 %v2386_v5, %v2112_v6  ;;  %v2127_v13 = vor.u32 %v2391_v12, %v2126_v52  ;;  %1326 = vmatpush.bf16.msra.mxu1 %v1995_v11  ;;  %v2136_v5 = vld [vmem:[#allocation8 + $0x1a8] sm:$0xf0]  ;;  %v2388_v52 = vld [vmem:[#allocation8 + $0x184] sm:$0xf] }
  0xb8   :  { %v2120_v12 = vld [vmem:[#allocation8 + $0x188] sm:$0xf0] }
  0xb9   :  { %v723_v24 = vadd.f32 %v722_v14, %v710_v18  ;;  %1332 = vmatpush.bf16.msra.mxu2 %v2115_v10  ;;  %v2384_v14 = vld [vmem:[#allocation8 + $0x164] sm:$0xf]  ;;  %v2118_v18 = vld [vmem:[#allocation8 + $0x180] sm:$0xf]  ;;  %1299 = vmatpush.bf16.msrb.mxu3 %v2127_v13  ;;  %v2128_v10 = vld [vmem:[#allocation8 + $0x198] sm:$0xf0] }
  0xba   :  { %v2107_v17 = vor.u32 %v2384_v14, %v2104_v15  ;;  %v2119_v20 = vor.u32 %v2389_v19, %v2118_v18  ;;  %v2131_v11 = vor.u32 %v2390_v59, %v2128_v10  ;;  %v2123_v14 = vor.u32 %v2388_v52, %v2120_v12 }
  0xbd   :  { %1333 = vmatpush.bf16.msra.mxu2 %v2107_v17  ;;  %1300 = vmatpush.bf16.msrb.mxu3 %v2119_v20  ;;  %v204_v17 = vperm.slane %v2670_v4, 3 }
  0xbe   :  { %v735_v29 = vpop.f32.mrf.mxu2  ;;  %v711_v42 = vpop.f32.mrf.mxu0 }
  0xbf   :  { %v736_v32 = vadd.f32 %v735_v29, %v723_v24  ;;  %v724_v43 = vpop.f32.mrf.mxu1  ;;  %v2380_v29 = vld [vmem:[#allocation8 + $0x144] sm:$0xf] }
  0xc0   :  { %v2673_v36 = vpop.f32.mrf.mxu3  ;;  %v2091_v34 = vor.u32 %v2380_v29, %v2088_v30  ;;  %v2160_v43 = vld [vmem:[#allocation8 + $0x1d8] sm:$0xf0] }
  0xc1   :  { %v856_v41 = vmax.f32 %v736_v32, 0.0  ;;  %v749_v24 = vadd.f32 %v2673_v36, %v202_v16  ;;  %1334 = vmatpush.bf16.msra.mxu2 %v2099_v25  ;;  %1345 = vmatpush.bf16.msra.mxu3 %v2179_v27  ;;  %v2378_v36 = vld [vmem:[#allocation8 + $0x134] sm:$0xf]  ;;  %v2163_v44 = vor.u32 %v2398_v40, %v2160_v43 }
  0xc2   :  { %v2083_v42 = vor.u32 %v2378_v36, %v2080_v39  ;;  %v2408_v36 = vld [vmem:[#allocation10 + $0x20] sm:$0xff]  ;;  %v2406_v43 = vld [vmem:[#allocation10 + $0x10] sm:$0xff] }
  0xc3   :  { %v860_v51 = vpack.c.bf16 %v856_v41, %v856_v41 }
  0xc5   :  { %1262 = vmatmul.bf16.vlgmr.msrb.gmra.mxu0 %v860_v51  ;;  %1335 = vmatpush.bf16.msra.mxu2 %v2091_v34  ;;  %v2411_v34 = vld [vmem:[#allocation10 + $0x38] sm:$0xff] }
  0xc6   :  { %v737_v1 = vpop.f32.mrf.mxu2  ;;  %1346 = vmatpush.bf16.msra.mxu3 %v2171_v37  ;;  %1494 = vmatpush.bf16.msrb.mxu0 %v2411_v34 }
  0xc7   :  { %v2056_v1 = vld [vmem:[#allocation8 + $0x108] sm:$0xf0] }
  0xc8   :  { %v750_v58 = vpop.f32.mrf.mxu3  ;;  %v2059_v8 = vor.u32 %v2372_v0, %v2056_v1 }
  0xc9   :  { %1336 = vmatpush.bf16.msra.mxu2 %v2083_v42  ;;  %v2139_v58 = vor.u32 %v2392_v3, %v2136_v5  ;;  %v2419_v42 = vld [vmem:[#allocation10 + $0x78] sm:$0xff] }
  0xca   :  { %1347 = vmatpush.bf16.msra.mxu3 %v2163_v44  ;;  %1495 = vmatpush.bf16.msrb.mxu0 %v2410_v35  ;;  %v2418_v44 = vld [vmem:[#allocation10 + $0x70] sm:$0xff] }
  0xcd   :  { %1337 = vmatpush.bf16.msra.mxu2 %v2075_v54 }
  0xd1   :  { %1338 = vmatpush.bf16.msra.mxu2 %v2067_v62 }
  0xd5   :  { %1314 = vmatmul.bf16.vlgmr.msra.gmra.mxu0 %v860_v51  ;;  %v2396_v51 = vld [vmem:[#allocation8 + $0x1c4] sm:$0xf]  ;;  %1339 = vmatpush.bf16.msra.mxu2 %v2059_v8 }
  0xd6   :  { %v761_v28 = vpop.f32.mrf.mxu0  ;;  %v2155_v56 = vor.u32 %v2396_v51, %v2152_v55  ;;  %v2415_v51 = vld [vmem:[#allocation10 + $0x58] sm:$0xff]  ;;  %v2413_v55 = vld [vmem:[#allocation10 + $0x48] sm:$0xff] }
  0xd7   :  { %v762_v32 = vadd.f32 %v761_v28, %v749_v24  ;;  %v774_v33 = vpop.f32.mrf.mxu1 }
  0xd8   :  { %1348 = vmatpush.bf16.msra.mxu3 %v2155_v56  ;;  %v928_v56 = vld [vmem:[%s2692_s4] sm:$0x3] }
  0xd9   :  { %v775_v38 = vadd.f32 %v774_v33, %v762_v32  ;;  %v930_v60 = vperm.slane %v928_v56, 0 }
  0xdb   :  { %v857_v41 = vmax.f32 %v775_v38, 0.0  ;;  %v2409_v38 = vld [vmem:[#allocation10 + $0x28] sm:$0xff] }
  0xdc   :  { %1349 = vmatpush.bf16.msra.mxu3 %v2147_v2  ;;  %1496 = vmatpush.bf16.msrb.mxu0 %v2409_v38 }
  0xdd   :  { %v861_v45 = vpack.c.bf16 %v857_v41, %v857_v41  ;;  %v2407_v41 = vld [vmem:[#allocation10 + $0x18] sm:$0xff] }
  0xde   :  { %v787_v46 = vpop.f32.mrf.mxu2  ;;  %v763_v48 = vpop.f32.mrf.mxu0 }
  0xdf   :  { %1275 = vmatmul.bf16.vlgmr.msrb.gmra.mxu1 %v861_v45  ;;  %v776_v53 = vpop.f32.mrf.mxu1  ;;  %v788_v13 = vadd.f32 %v787_v46, %v203_v9  ;;  %v2405_v46 = vld [vmem:[#allocation10 + $0x8] sm:$0xff]  ;;  %v2404_v48 = vld [vmem:[#allocation10] sm:$0xff] }
  0xe0   :  { %v800_v47 = vpop.f32.mrf.mxu3  ;;  %1350 = vmatpush.bf16.msra.mxu3 %v2139_v58  ;;  %1497 = vmatpush.bf16.msrb.mxu0 %v2408_v36  ;;  %v2414_v53 = vld [vmem:[#allocation10 + $0x50] sm:$0xff] }
  0xe1   :  { %v801_v15 = vadd.f32 %v800_v47, %v788_v13  ;;  %1507 = vmatpush.bf16.msrb.mxu1 %v2419_v42  ;;  %v2417_v47 = vld [vmem:[#allocation10 + $0x68] sm:$0xff] }
  0xe4   :  { %1351 = vmatpush.bf16.msra.mxu3 %v2131_v11  ;;  %1498 = vmatpush.bf16.msrb.mxu0 %v2407_v41 }
  0xe5   :  { %1508 = vmatpush.bf16.msrb.mxu1 %v2418_v44 }
  0xe6   :  { %v789_v6 = vpop.f32.mrf.mxu2 }
  0xe8   :  { %v802_v7 = vpop.f32.mrf.mxu3  ;;  %1352 = vmatpush.bf16.msra.mxu3 %v2123_v14  ;;  %1499 = vmatpush.bf16.msrb.mxu0 %v2406_v43 }
  0xe9   :  { %1509 = vmatpush.bf16.msrb.mxu1 %v2417_v47  ;;  %v931_v7 = vperm.slane %v928_v56, 1 }
  0xec   :  { %1500 = vmatpush.bf16.msrb.mxu0 %v2405_v46 }
  0xed   :  { %1510 = vmatpush.bf16.msrb.mxu1 %v2416_v49 }
  0xef   :  { %1327 = vmatmul.bf16.vlgmr.msra.gmra.mxu1 %v861_v45 }
  0xf0   :  { %1501 = vmatpush.bf16.msrb.mxu0 %v2404_v48 }
  0xf1   :  { %1511 = vmatpush.bf16.msrb.mxu1 %v2415_v51 }
  0xf5   :  { %1512 = vmatpush.bf16.msrb.mxu1 %v2414_v53 }
  0xf6   :  { %v813_v16 = vpop.f32.mrf.mxu0 }
  0xf7   :  { %v814_v18 = vadd.f32 %v813_v16, %v801_v15  ;;  %v826_v19 = vpop.f32.mrf.mxu1 }
  0xf8   :  { %v827_v21 = vadd.f32 %v826_v19, %v204_v17 }
  0xf9   :  { %v858_v20 = vmax.f32 %v814_v18, 0.0  ;;  %1513 = vmatpush.bf16.msrb.mxu1 %v2413_v55  ;;  %v2432_v18 = vld [vmem:[%s2694_s6] ss:$0 sm:$0xff] }
  0xfb   :  { %v862_v22 = vpack.c.bf16 %v858_v20, %v858_v20 }
  0xfd   :  { %1288 = vmatmul.bf16.vlgmr.msrb.gmra.mxu2 %v862_v22  ;;  %1514 = vmatpush.bf16.msrb.mxu1 %v2412_v57 }
  0xfe   :  { %v839_v23 = vpop.f32.mrf.mxu2  ;;  %v815_v26 = vpop.f32.mrf.mxu0 }
  0xff   :  { %v840_v24 = vadd.f32 %v839_v23, %v827_v21  ;;  %v852_v25 = vpop.f32.mrf.mxu3  ;;  %v828_v27 = vpop.f32.mrf.mxu1 }
 0x101   :  { %v853_v28 = vadd.f32 %v852_v25, %v840_v24 }
 0x103   :  { %v859_v29 = vmax.f32 %v853_v28, 0.0 }
 0x105   :  { %v863_v30 = vpack.c.bf16 %v859_v29, %v859_v29 }
 0x106   :  { %v841_v31 = vpop.f32.mrf.mxu2 }
 0x107   :  { %v854_v32 = vpop.f32.mrf.mxu3  ;;  %1301 = vmatmul.bf16.vlgmr.msrb.gmra.mxu3 %v863_v30 }
 0x10d   :  { %1340 = vmatmul.bf16.vlgmr.msra.gmra.mxu2 %v862_v22 }
 0x117   :  { %1353 = vmatmul.bf16.vlgmr.msra.gmra.mxu3 %v863_v30 }
 0x142   :  { %v1263_v4 = vpop.f32.mrf.mxu0 }
 0x143   :  { %v1264_v62 = vadd.f32 %v1263_v4, %v930_v60 }
 0x14a   :  { %v1265_v33 = vpop.f32.mrf.mxu0 }
 0x152   :  { %v1315_v37 = vpop.f32.mrf.mxu0 }
 0x153   :  { %v1316_v9 = vadd.f32 %v1315_v37, %v931_v7 }
 0x15a   :  { %v1317_v39 = vpop.f32.mrf.mxu0 }
 0x15c   :  { %v1276_v40 = vpop.f32.mrf.mxu1 }
 0x15d   :  { %v1277_v63 = vadd.f32 %v1276_v40, %v1264_v62 }
 0x164   :  { %v1278_v45 = vpop.f32.mrf.mxu1 }
 0x16c   :  { %v1328_v50 = vpop.f32.mrf.mxu1 }
 0x16d   :  { %v1329_v59 = vadd.f32 %v1328_v50, %v1316_v9 }
 0x174   :  { %v1330_v54 = vpop.f32.mrf.mxu1 }
 0x180   :  { %v1289_v61 = vpop.f32.mrf.mxu2 }
 0x181   :  { %v1290_v0 = vadd.f32 %v1289_v61, %v1277_v63 }
 0x188   :  { %v1291_v1 = vpop.f32.mrf.mxu2 }
 0x18a   :  { %v1302_v2 = vpop.f32.mrf.mxu3 }
 0x18b   :  { %v1303_v3 = vadd.f32 %v1302_v2, %v1290_v0 }
 0x18d   :  { %v1358_v5 = vmax.f32 %v1303_v3, 0.0 }
 0x18f   :  { %v1360_v6 = vpack.c.bf16 %v1358_v5, %v1358_v5 }
 0x190   :  { %v1341_v8 = vpop.f32.mrf.mxu2 }
 0x191   :  { %1502 = vmatmul.bf16.vlgmr.msrb.gmra.mxu0 %v1360_v6  ;;  %v1342_v10 = vadd.f32 %v1341_v8, %v1329_v59 }
 0x192   :  { %v1304_v58 = vpop.f32.mrf.mxu3 }
 0x198   :  { %v1343_v11 = vpop.f32.mrf.mxu2 }
 0x19a   :  { %v1354_v52 = vpop.f32.mrf.mxu3 }
 0x19b   :  { %v1355_v12 = vadd.f32 %v1354_v52, %v1342_v10 }
 0x19d   :  { %v1359_v13 = vmax.f32 %v1355_v12, 0.0 }
 0x19f   :  { %v1361_v14 = vpack.c.bf16 %v1359_v13, %v1359_v13 }
 0x1a1   :  { %1515 = vmatmul.bf16.vlgmr.msrb.gmra.mxu1 %v1361_v14 }
 0x1a2   :  { %v1356_v15 = vpop.f32.mrf.mxu3 }
 0x20e   :  { %v1503_v16 = vpop.f32.mrf.mxu0 }
 0x20f   :  { %v1504_v19 = vadd.f32 %v2432_v18, %v1503_v16 }
 0x216   :  { %v1505_v17 = vpop.f32.mrf.mxu0 }
 0x21e   :  { %v1516_v20 = vpop.f32.mrf.mxu1 }
 0x21f   :  { %v1517_v21 = vadd.f32 %v1516_v20, %v1504_v19 }
 0x221   :  { %1520 = vst [vmem:[#allocation11] sm:$0xff] %v1517_v21 }
 0x222   :  { %1531 = dma.vmem_to_hbm [thread:$0]  %s1527_s8, 128, %s1529_s11, [#allocation4]  }
 0x226   :  { %v1518_v22 = vpop.f32.mrf.mxu1 }
 0x227   :  { %2583 = dma.done.wait [#allocation4], 128  }
 0x228   :  { %2584 = vsyncadd [#allocation4], 4294967168 }
 0x229   :  { %1536 = vsyncpa [#allocation3], 1 }
 0x22a   :  { %1537 = vsyncpa [#allocation6], 1 }
 0x22b   :  { %1538 = vsyncpa [#allocation9], 1 }
 0x22c   :  { %1539 = vsyncpa [#allocation4], 1 }

</bundles_post_ra>
